<compile_context>
chip_gen: v7x
topology: tpu7x:2x2x1
jax: 0.10.0
libtpu: 0.0.40
codegen_flags: <defaults>
</compile_context>

<pallas_src>
import jax
import jax.numpy as jnp
from jax.experimental import pallas as pl
from jax.experimental.pallas import tpu as pltpu


K_FEATURES = 6  # nn.Linear(6, 3) input features
N_CLASSES = 3   # output logits


def _round_up(n, m):
    return ((n + m - 1) // m) * m


def _linear_sigmoid_kernel(w_ref, b_ref, xT_ref, oT_ref):
    """sigmoid(W^T x + b) for one batch tile, batch on the lane axis.

    w_ref  : SMEM (6, 3)       weights (input-feature major), read as scalars
    b_ref  : SMEM (3,)         bias, read as scalars
    xT_ref : VMEM (6, TILE_B)  features x batch  (lane-dense)
    oT_ref : VMEM (3, TILE_B)  classes  x batch  (lane-dense)
    """
    # K=6, N=3 contraction fully unrolled as scalar-broadcast MACs on the VPU.
    for j in range(N_CLASSES):
        z = w_ref[0, j] * xT_ref[pl.ds(0, 1), :]
        for k in range(1, K_FEATURES):
            z = z + w_ref[k, j] * xT_ref[pl.ds(k, 1), :]
        z = z + b_ref[j]
        # exp lands on the EUP, keeping VALU slots free for the MACs above.
        oT_ref[pl.ds(j, 1), :] = jax.nn.sigmoid(z)


def multilabel_net_forward(x, w, b, *, tile_b=4096):
    """Forward pass of MultiLabelNet: sigmoid(x @ W + b).

    x: (B, 6) float32
    w: (6, 3) float32  (transpose of PyTorch's (3, 6) nn.Linear weight)
    b: (3,)   float32
    returns (B, 3) float32

    Note: for very small B (< ~1k rows) plain XLA `jax.nn.sigmoid(x @ w + b)`
    is cheaper than any custom-call; we always take the Pallas path here so
    the kernel is exercised.
    """
    B = x.shape[0]
    assert x.shape == (B, K_FEATURES)
    assert w.shape == (K_FEATURES, N_CLASSES)
    assert b.shape == (N_CLASSES,)

    # Batch tile: a multiple of 128 lanes, clamped for small batches.
    tile_b = max(128, min(_round_up(tile_b, 128), _round_up(B, 128)))
    grid = (pl.cdiv(B, tile_b),)
    b_pad = grid[0] * tile_b

    # Wrapper-side relayout: batch on the lane axis; pad to a whole tile.
    xT = x.T
    if b_pad != B:
        xT = jnp.pad(xT, ((0, 0), (0, b_pad - B)))

    oT = pl.pallas_call(
        _linear_sigmoid_kernel,
        out_shape=jax.ShapeDtypeStruct((N_CLASSES, b_pad), jnp.float32),
        grid=grid,
        in_specs=[
            # Tiny parameters live in SMEM, resident for the whole grid.
            pl.BlockSpec(memory_space=pltpu.MemorySpace.SMEM),
            pl.BlockSpec(memory_space=pltpu.MemorySpace.SMEM),
            # Batch-tiled, double-buffered streaming input (lane-dense).
            pl.BlockSpec((K_FEATURES, tile_b), lambda i: (0, i)),
        ],
        out_specs=pl.BlockSpec((N_CLASSES, tile_b), lambda i: (0, i)),
        compiler_params=pltpu.CompilerParams(
            # Batch axis is embarrassingly parallel (lets v7x use both TCs).
            dimension_semantics=("parallel",),
            # Stay well inside v7x's 64 MiB physical VMEM.
            vmem_limit_bytes=32 * 1024 * 1024,
        ),
    )(w, b, xT)

    # Strip padding and return in the PyTorch (B, 3) orientation.
    return oT[:, :B].T


if __name__ == "__main__":
    key = jax.random.PRNGKey(0)
    kx, kw, kb, kx2 = jax.random.split(key, 4)

    # Deterministic synthetic parameters for nn.Linear(6, 3),
    # weight stored transposed as (6, 3).
    w = jax.random.normal(kw, (K_FEATURES, N_CLASSES), dtype=jnp.float32) * 0.1
    b = jax.random.normal(kb, (N_CLASSES,), dtype=jnp.float32) * 0.1

    # Small example input: batch=2, features=6.
    x = jax.random.normal(kx, (2, K_FEATURES), dtype=jnp.float32)

    out = multilabel_net_forward(x, w, b)
    out = jax.block_until_ready(out)

    ref = jax.nn.sigmoid(x @ w + b[None, :])
    assert out.shape == (2, N_CLASSES)
    assert jnp.allclose(out, ref, atol=1e-5), "mismatch vs reference (small batch)"

    # Exercise the multi-tile / padded path as well (grid > 1, B % tile != 0).
    x_big = jax.random.normal(kx2, (1000, K_FEATURES), dtype=jnp.float32)
    out_big = jax.block_until_ready(multilabel_net_forward(x_big, w, b, tile_b=256))
    ref_big = jax.nn.sigmoid(x_big @ w + b[None, :])
    assert out_big.shape == (1000, N_CLASSES)
    assert jnp.allclose(out_big, ref_big, atol=1e-5), "mismatch vs reference (tiled batch)"

    print("KERNEL_OK")
</pallas_src>

<mosaic_0001>
module attributes {stable_mosaic.version = 11 : i64} {
  func.func @_linear_sigmoid_kernel(%arg0: i32, %arg1: memref<6x3xf32, #tpu.memory_space<smem>>, %arg2: memref<3xf32, #tpu.memory_space<smem>>, %arg3: memref<6x128xf32, #tpu.memory_space<vmem>>, %arg4: memref<3x128xf32, #tpu.memory_space<vmem>>) attributes {dimension_semantics = [#tpu.dimension_semantics<parallel>], iteration_bounds = array<i64: 1>, scalar_prefetch = 0 : i64, scratch_operands = 0 : i64, tpu.core_type = #tpu.core_type<tc>, window_params = [{transform_indices = @transform_0, window_bounds = array<i64: 6, 3>}, {transform_indices = @transform_1, window_bounds = array<i64: 3>}, {transform_indices = @transform_2, window_bounds = array<i64: 6, 128>}, {transform_indices = @transform_3, window_bounds = array<i64: 3, 128>}]} {
    %c0 = arith.constant 0 : index
    %c0_0 = arith.constant 0 : index
    %0 = memref.load %arg1[%c0, %c0_0] : memref<6x3xf32, #tpu.memory_space<smem>>
    %c0_1 = arith.constant 0 : index
    %c0_2 = arith.constant 0 : index
    %1 = vector.load %arg3[%c0_1, %c0_2] : memref<6x128xf32, #tpu.memory_space<vmem>>, vector<1x128xf32>
    %2 = vector.broadcast %0 : f32 to vector<1x128xf32>
    %3 = arith.mulf %2, %1 : vector<1x128xf32>
    %c1 = arith.constant 1 : index
    %c0_3 = arith.constant 0 : index
    %4 = memref.load %arg1[%c1, %c0_3] : memref<6x3xf32, #tpu.memory_space<smem>>
    %c1_4 = arith.constant 1 : index
    %c0_5 = arith.constant 0 : index
    %5 = vector.load %arg3[%c1_4, %c0_5] : memref<6x128xf32, #tpu.memory_space<vmem>>, vector<1x128xf32>
    %6 = vector.broadcast %4 : f32 to vector<1x128xf32>
    %7 = arith.mulf %6, %5 : vector<1x128xf32>
    %8 = arith.addf %3, %7 : vector<1x128xf32>
    %c2 = arith.constant 2 : index
    %c0_6 = arith.constant 0 : index
    %9 = memref.load %arg1[%c2, %c0_6] : memref<6x3xf32, #tpu.memory_space<smem>>
    %c2_7 = arith.constant 2 : index
    %c0_8 = arith.constant 0 : index
    %10 = vector.load %arg3[%c2_7, %c0_8] : memref<6x128xf32, #tpu.memory_space<vmem>>, vector<1x128xf32>
    %11 = vector.broadcast %9 : f32 to vector<1x128xf32>
    %12 = arith.mulf %11, %10 : vector<1x128xf32>
    %13 = arith.addf %8, %12 : vector<1x128xf32>
    %c3 = arith.constant 3 : index
    %c0_9 = arith.constant 0 : index
    %14 = memref.load %arg1[%c3, %c0_9] : memref<6x3xf32, #tpu.memory_space<smem>>
    %c3_10 = arith.constant 3 : index
    %c0_11 = arith.constant 0 : index
    %15 = vector.load %arg3[%c3_10, %c0_11] : memref<6x128xf32, #tpu.memory_space<vmem>>, vector<1x128xf32>
    %16 = vector.broadcast %14 : f32 to vector<1x128xf32>
    %17 = arith.mulf %16, %15 : vector<1x128xf32>
    %18 = arith.addf %13, %17 : vector<1x128xf32>
    %c4 = arith.constant 4 : index
    %c0_12 = arith.constant 0 : index
    %19 = memref.load %arg1[%c4, %c0_12] : memref<6x3xf32, #tpu.memory_space<smem>>
    %c4_13 = arith.constant 4 : index
    %c0_14 = arith.constant 0 : index
    %20 = vector.load %arg3[%c4_13, %c0_14] : memref<6x128xf32, #tpu.memory_space<vmem>>, vector<1x128xf32>
    %21 = vector.broadcast %19 : f32 to vector<1x128xf32>
    %22 = arith.mulf %21, %20 : vector<1x128xf32>
    %23 = arith.addf %18, %22 : vector<1x128xf32>
    %c5 = arith.constant 5 : index
    %c0_15 = arith.constant 0 : index
    %24 = memref.load %arg1[%c5, %c0_15] : memref<6x3xf32, #tpu.memory_space<smem>>
    %c5_16 = arith.constant 5 : index
    %c0_17 = arith.constant 0 : index
    %25 = vector.load %arg3[%c5_16, %c0_17] : memref<6x128xf32, #tpu.memory_space<vmem>>, vector<1x128xf32>
    %26 = vector.broadcast %24 : f32 to vector<1x128xf32>
    %27 = arith.mulf %26, %25 : vector<1x128xf32>
    %28 = arith.addf %23, %27 : vector<1x128xf32>
    %c0_18 = arith.constant 0 : index
    %29 = memref.load %arg2[%c0_18] : memref<3xf32, #tpu.memory_space<smem>>
    %30 = vector.broadcast %29 : f32 to vector<1x128xf32>
    %31 = arith.addf %28, %30 : vector<1x128xf32>
    %32 = arith.negf %31 : vector<1x128xf32>
    %33 = math.exp %32 : vector<1x128xf32>
    %cst = arith.constant 1.000000e+00 : f32
    %34 = vector.broadcast %cst : f32 to vector<1x128xf32>
    %35 = arith.addf %34, %33 : vector<1x128xf32>
    %36 = arith.divf %34, %35 : vector<1x128xf32>
    %c0_19 = arith.constant 0 : index
    %c0_20 = arith.constant 0 : index
    %37 = vector.load %arg4[%c0_19, %c0_20] : memref<3x128xf32, #tpu.memory_space<vmem>>, vector<1x128xf32>
    tpu.vector_store %arg4[%c0_19, %c0_20], %36 {strides = array<i32>} : memref<3x128xf32, #tpu.memory_space<vmem>>, vector<1x128xf32>,
    %c0_21 = arith.constant 0 : index
    %c1_22 = arith.constant 1 : index
    %38 = memref.load %arg1[%c0_21, %c1_22] : memref<6x3xf32, #tpu.memory_space<smem>>
    %c0_23 = arith.constant 0 : index
    %c0_24 = arith.constant 0 : index
    %39 = vector.load %arg3[%c0_23, %c0_24] : memref<6x128xf32, #tpu.memory_space<vmem>>, vector<1x128xf32>
    %40 = vector.broadcast %38 : f32 to vector<1x128xf32>
    %41 = arith.mulf %40, %39 : vector<1x128xf32>
    %c1_25 = arith.constant 1 : index
    %c1_26 = arith.constant 1 : index
    %42 = memref.load %arg1[%c1_25, %c1_26] : memref<6x3xf32, #tpu.memory_space<smem>>
    %c1_27 = arith.constant 1 : index
    %c0_28 = arith.constant 0 : index
    %43 = vector.load %arg3[%c1_27, %c0_28] : memref<6x128xf32, #tpu.memory_space<vmem>>, vector<1x128xf32>
    %44 = vector.broadcast %42 : f32 to vector<1x128xf32>
    %45 = arith.mulf %44, %43 : vector<1x128xf32>
    %46 = arith.addf %41, %45 : vector<1x128xf32>
    %c2_29 = arith.constant 2 : index
    %c1_30 = arith.constant 1 : index
    %47 = memref.load %arg1[%c2_29, %c1_30] : memref<6x3xf32, #tpu.memory_space<smem>>
    %c2_31 = arith.constant 2 : index
    %c0_32 = arith.constant 0 : index
    %48 = vector.load %arg3[%c2_31, %c0_32] : memref<6x128xf32, #tpu.memory_space<vmem>>, vector<1x128xf32>
    %49 = vector.broadcast %47 : f32 to vector<1x128xf32>
    %50 = arith.mulf %49, %48 : vector<1x128xf32>
    %51 = arith.addf %46, %50 : vector<1x128xf32>
    %c3_33 = arith.constant 3 : index
    %c1_34 = arith.constant 1 : index
    %52 = memref.load %arg1[%c3_33, %c1_34] : memref<6x3xf32, #tpu.memory_space<smem>>
    %c3_35 = arith.constant 3 : index
    %c0_36 = arith.constant 0 : index
    %53 = vector.load %arg3[%c3_35, %c0_36] : memref<6x128xf32, #tpu.memory_space<vmem>>, vector<1x128xf32>
    %54 = vector.broadcast %52 : f32 to vector<1x128xf32>
    %55 = arith.mulf %54, %53 : vector<1x128xf32>
    %56 = arith.addf %51, %55 : vector<1x128xf32>
    %c4_37 = arith.constant 4 : index
    %c1_38 = arith.constant 1 : index
    %57 = memref.load %arg1[%c4_37, %c1_38] : memref<6x3xf32, #tpu.memory_space<smem>>
    %c4_39 = arith.constant 4 : index
    %c0_40 = arith.constant 0 : index
    %58 = vector.load %arg3[%c4_39, %c0_40] : memref<6x128xf32, #tpu.memory_space<vmem>>, vector<1x128xf32>
    %59 = vector.broadcast %57 : f32 to vector<1x128xf32>
    %60 = arith.mulf %59, %58 : vector<1x128xf32>
    %61 = arith.addf %56, %60 : vector<1x128xf32>
    %c5_41 = arith.constant 5 : index
    %c1_42 = arith.constant 1 : index
    %62 = memref.load %arg1[%c5_41, %c1_42] : memref<6x3xf32, #tpu.memory_space<smem>>
    %c5_43 = arith.constant 5 : index
    %c0_44 = arith.constant 0 : index
    %63 = vector.load %arg3[%c5_43, %c0_44] : memref<6x128xf32, #tpu.memory_space<vmem>>, vector<1x128xf32>
    %64 = vector.broadcast %62 : f32 to vector<1x128xf32>
    %65 = arith.mulf %64, %63 : vector<1x128xf32>
    %66 = arith.addf %61, %65 : vector<1x128xf32>
    %c1_45 = arith.constant 1 : index
    %67 = memref.load %arg2[%c1_45] : memref<3xf32, #tpu.memory_space<smem>>
    %68 = vector.broadcast %67 : f32 to vector<1x128xf32>
    %69 = arith.addf %66, %68 : vector<1x128xf32>
    %70 = arith.negf %69 : vector<1x128xf32>
    %71 = math.exp %70 : vector<1x128xf32>
    %cst_46 = arith.constant 1.000000e+00 : f32
    %72 = vector.broadcast %cst_46 : f32 to vector<1x128xf32>
    %73 = arith.addf %72, %71 : vector<1x128xf32>
    %74 = arith.divf %72, %73 : vector<1x128xf32>
    %c1_47 = arith.constant 1 : index
    %c0_48 = arith.constant 0 : index
    %75 = vector.load %arg4[%c1_47, %c0_48] : memref<3x128xf32, #tpu.memory_space<vmem>>, vector<1x128xf32>
    tpu.vector_store %arg4[%c1_47, %c0_48], %74 {strides = array<i32>} : memref<3x128xf32, #tpu.memory_space<vmem>>, vector<1x128xf32>,
    %c0_49 = arith.constant 0 : index
    %c2_50 = arith.constant 2 : index
    %76 = memref.load %arg1[%c0_49, %c2_50] : memref<6x3xf32, #tpu.memory_space<smem>>
    %c0_51 = arith.constant 0 : index
    %c0_52 = arith.constant 0 : index
    %77 = vector.load %arg3[%c0_51, %c0_52] : memref<6x128xf32, #tpu.memory_space<vmem>>, vector<1x128xf32>
    %78 = vector.broadcast %76 : f32 to vector<1x128xf32>
    %79 = arith.mulf %78, %77 : vector<1x128xf32>
    %c1_53 = arith.constant 1 : index
    %c2_54 = arith.constant 2 : index
    %80 = memref.load %arg1[%c1_53, %c2_54] : memref<6x3xf32, #tpu.memory_space<smem>>
    %c1_55 = arith.constant 1 : index
    %c0_56 = arith.constant 0 : index
    %81 = vector.load %arg3[%c1_55, %c0_56] : memref<6x128xf32, #tpu.memory_space<vmem>>, vector<1x128xf32>
    %82 = vector.broadcast %80 : f32 to vector<1x128xf32>
    %83 = arith.mulf %82, %81 : vector<1x128xf32>
    %84 = arith.addf %79, %83 : vector<1x128xf32>
    %c2_57 = arith.constant 2 : index
    %c2_58 = arith.constant 2 : index
    %85 = memref.load %arg1[%c2_57, %c2_58] : memref<6x3xf32, #tpu.memory_space<smem>>
    %c2_59 = arith.constant 2 : index
    %c0_60 = arith.constant 0 : index
    %86 = vector.load %arg3[%c2_59, %c0_60] : memref<6x128xf32, #tpu.memory_space<vmem>>, vector<1x128xf32>
    %87 = vector.broadcast %85 : f32 to vector<1x128xf32>
    %88 = arith.mulf %87, %86 : vector<1x128xf32>
    %89 = arith.addf %84, %88 : vector<1x128xf32>
    %c3_61 = arith.constant 3 : index
    %c2_62 = arith.constant 2 : index
    %90 = memref.load %arg1[%c3_61, %c2_62] : memref<6x3xf32, #tpu.memory_space<smem>>
    %c3_63 = arith.constant 3 : index
    %c0_64 = arith.constant 0 : index
    %91 = vector.load %arg3[%c3_63, %c0_64] : memref<6x128xf32, #tpu.memory_space<vmem>>, vector<1x128xf32>
    %92 = vector.broadcast %90 : f32 to vector<1x128xf32>
    %93 = arith.mulf %92, %91 : vector<1x128xf32>
    %94 = arith.addf %89, %93 : vector<1x128xf32>
    %c4_65 = arith.constant 4 : index
    %c2_66 = arith.constant 2 : index
    %95 = memref.load %arg1[%c4_65, %c2_66] : memref<6x3xf32, #tpu.memory_space<smem>>
    %c4_67 = arith.constant 4 : index
    %c0_68 = arith.constant 0 : index
    %96 = vector.load %arg3[%c4_67, %c0_68] : memref<6x128xf32, #tpu.memory_space<vmem>>, vector<1x128xf32>
    %97 = vector.broadcast %95 : f32 to vector<1x128xf32>
    %98 = arith.mulf %97, %96 : vector<1x128xf32>
    %99 = arith.addf %94, %98 : vector<1x128xf32>
    %c5_69 = arith.constant 5 : index
    %c2_70 = arith.constant 2 : index
    %100 = memref.load %arg1[%c5_69, %c2_70] : memref<6x3xf32, #tpu.memory_space<smem>>
    %c5_71 = arith.constant 5 : index
    %c0_72 = arith.constant 0 : index
    %101 = vector.load %arg3[%c5_71, %c0_72] : memref<6x128xf32, #tpu.memory_space<vmem>>, vector<1x128xf32>
    %102 = vector.broadcast %100 : f32 to vector<1x128xf32>
    %103 = arith.mulf %102, %101 : vector<1x128xf32>
    %104 = arith.addf %99, %103 : vector<1x128xf32>
    %c2_73 = arith.constant 2 : index
    %105 = memref.load %arg2[%c2_73] : memref<3xf32, #tpu.memory_space<smem>>
    %106 = vector.broadcast %105 : f32 to vector<1x128xf32>
    %107 = arith.addf %104, %106 : vector<1x128xf32>
    %108 = arith.negf %107 : vector<1x128xf32>
    %109 = math.exp %108 : vector<1x128xf32>
    %cst_74 = arith.constant 1.000000e+00 : f32
    %110 = vector.broadcast %cst_74 : f32 to vector<1x128xf32>
    %111 = arith.addf %110, %109 : vector<1x128xf32>
    %112 = arith.divf %110, %111 : vector<1x128xf32>
    %c2_75 = arith.constant 2 : index
    %c0_76 = arith.constant 0 : index
    %113 = vector.load %arg4[%c2_75, %c0_76] : memref<3x128xf32, #tpu.memory_space<vmem>>, vector<1x128xf32>
    tpu.vector_store %arg4[%c2_75, %c0_76], %112 {strides = array<i32>} : memref<3x128xf32, #tpu.memory_space<vmem>>, vector<1x128xf32>,
    return
  }
  func.func @transform_0(%arg0: i32) -> (i32, i32) {
    %c0_i32 = arith.constant 0 : i32
    %c0_i32_0 = arith.constant 0 : i32
    %c0_i32_1 = arith.constant 0 : i32
    return %c0_i32, %c0_i32_0 : i32, i32
  }
  func.func @transform_1(%arg0: i32) -> i32 {
    %c0_i32 = arith.constant 0 : i32
    %c0_i32_0 = arith.constant 0 : i32
    return %c0_i32 : i32
  }
  func.func @transform_2(%arg0: i32) -> (i32, i32) {
    %c0_i32 = arith.constant 0 : i32
    %c0_i32_0 = arith.constant 0 : i32
    return %c0_i32, %arg0 : i32, i32
  }
  func.func @transform_3(%arg0: i32) -> (i32, i32) {
    %c0_i32 = arith.constant 0 : i32
    %c0_i32_0 = arith.constant 0 : i32
    return %c0_i32, %arg0 : i32, i32
  }
}

</mosaic_0001>

<bundles_post_ra>
// kernel: tpu_custom_call.1
= control target key start
LH: loop header
LB: loop body
LE: loop exit
PB: predicated region body
PF: predicated region fallthrough
CT: control target
= control target key end

     0   :  { %8 = vsyncpa [#allocation4], 0  ;;  %s402_s0 = inlined_call_operand.vmem [shape: f32[6,3], index: 0, kind: input, shape index: {}]   ;;  %s403_s1 = inlined_call_operand.vmem [shape: f32[3], index: 1, kind: input, shape index: {}]   ;;  %s404_s2 = inlined_call_operand.vmem [shape: f32[6,128], index: 2, kind: input, shape index: {}]   ;;  %s405_s3 = inlined_call_operand.hbm [shape: f32[3,128], index: 3, kind: output, shape index: {}]  }
   0x1   :  { %9 = vsyncpa [#allocation6], 0 }
   0x2   :  { %10 = vsyncpa [#allocation3], 0  ;;  %s17_s14 = sshll.u32 %s402_s0, 4  ;;  %s27_s17 = sshll.u32 %s403_s1, 4  ;;  %s18_s14 = int_to_ptr.vmem [resolvable:$true] %s17_s14  ;;  %s28_s17 = int_to_ptr.vmem [resolvable:$true] %s27_s17 }
   0x3   :  { %s210_s18 = scalar_lea.vmem %s18_s14, 128  ;;  %p215_p1 = scmp.lt.s32.totalorder %s18_s14, %s18_s14 }
   0x4   :  { %p211_p0 = scmp.ne.s32.totalorder %s18_s14, %s210_s18  ;;  %p216_p2 = scmp.lt.s32.totalorder %s210_s18, %s210_s18 }
   0x6   :  { %p217_p3 = por %p216_p2, %p215_p1 }
   0x8   :  { %p218_p4 = pnand %p217_p3, %p211_p0 }
   0xa   :  { %221 = shalt.err (!%p218_p4)
}
   0xb   :  { %s262_s19 = smov [#allocation2]   ;;  %s222_s20 = scalar_lea.vmem %s28_s17, 16 }
   0xc   :  { %20 = dma.vmem_to_smem %s18_s14, 128, %s262_s19, [#allocation4]  }
   0xd   :  { %p223_p5 = scmp.ne.s32.totalorder %s28_s17, %s222_s20  ;;  %p227_p6 = scmp.lt.s32.totalorder %s28_s17, %s28_s17 }
   0xe   :  { %p228_p7 = scmp.lt.s32.totalorder %s222_s20, %s222_s20 }
  0x10   :  { %p229_p8 = por %p228_p7, %p227_p6 }
  0x12   :  { %p230_p9 = pnand %p229_p8, %p223_p5 }
  0x14   :  { %233 = shalt.err (!%p230_p9)
}
  0x15   :  { %s263_s0 = smov [#allocation5]  }
  0x16   :  { %30 = dma.vmem_to_smem %s28_s17, 16, %s263_s0, [#allocation6]  }
  0x17   :  { %256 = dma.done.wait [#allocation4], 128  }
  0x18   :  { %257 = vsyncadd [#allocation4], 4294967168 }
  0x19   :  { %258 = dma.done.wait [#allocation6], 16  }
  0x1a   :  { %259 = vsyncadd [#allocation6], 4294967280 }
  0x1b   :  { %39 = sfence }
  0x1c   :  { %s40_s1 = sld [smem:[#allocation2]]  ;;  %v41_v0 = vld [vmem:[%s404_s2] sm:$0x1]  ;;  %v45_v1 = vld [vmem:[%s404_s2 + $0x1] sm:$0x1]  ;;  %s299_s30 = sld [smem:[#allocation2 + $0x1]] }
  0x1d   :  { %s173_s21 = sld [smem:[#allocation2 + $0x80]]  ;;  %v50_v2 = vld [vmem:[%s404_s2 + $0x2] sm:$0x1]  ;;  %s304_s6 = sld [smem:[#allocation2 + $0x81]]  ;;  %v55_v5 = vld [vmem:[%s404_s2 + $0x3] sm:$0x1] }
  0x1e   :  { %s174_s22 = sld [smem:[#allocation2 + $0x100]]  ;;  %s306_s7 = sld [smem:[#allocation2 + $0x101]]  ;;  %v60_v9 = vld [vmem:[%s404_s2 + $0x4] sm:$0x1]  ;;  %v80_v13 = vld [vmem:[%s404_s2] sm:$0x1] }
  0x1f   :  { %s175_s23 = sld [smem:[#allocation2 + $0x180]]  ;;  %s313_s11 = sld [smem:[#allocation2 + $0x181]]  ;;  %v84_v16 = vld [vmem:[%s404_s2 + $0x1] sm:$0x1]  ;;  %v89_v17 = vld [vmem:[%s404_s2 + $0x2] sm:$0x1] }
  0x20   :  { %s176_s24 = sld [smem:[#allocation2 + $0x200]]  ;;  %s318_s14 = sld [smem:[#allocation2 + $0x201]]  ;;  %v65_v19 = vld [vmem:[%s404_s2 + $0x5] sm:$0x1]  ;;  %v94_v26 = vld [vmem:[%s404_s2 + $0x3] sm:$0x1] }
  0x21   :  { %s291_s25 = sld [smem:[#allocation2 + $0x280]]  ;;  %s320_s15 = sld [smem:[#allocation2 + $0x281]]  ;;  %v99_v30 = vld [vmem:[%s404_s2 + $0x4] sm:$0x1]  ;;  %v119_v34 = vld [vmem:[%s404_s2] sm:$0x1] }
  0x22   :  { %v42_v3 = vstv %s40_s1  ;;  %s311_s10 = sld [smem:[#allocation5]]  ;;  %s325_s18 = sld [smem:[#allocation2 + $0x2]]  ;;  %v81_v21 = vstv %s299_s30  ;;  %v123_v35 = vld [vmem:[%s404_s2 + $0x1] sm:$0x1]  ;;  %v128_v40 = vld [vmem:[%s404_s2 + $0x2] sm:$0x1] }
  0x23   :  { %v46_v4 = vstv %s173_s21  ;;  %v43_v6 = vmul.f32 %v42_v3, %v41_v0  ;;  %s333_s21 = sld [smem:[#allocation2 + $0x82]]  ;;  %v82_v23 = vmul.f32 %v81_v21, %v80_v13  ;;  %v85_v24 = vstv %s304_s6  ;;  %s358_s5 = sld [smem:[#allocation5 + $0x1]]  ;;  %v104_v43 = vld [vmem:[%s404_s2 + $0x5] sm:$0x1]  ;;  %v133_v46 = vld [vmem:[%s404_s2 + $0x3] sm:$0x1] }
  0x24   :  { %v47_v7 = vmul.f32 %v46_v4, %v45_v1  ;;  %v51_v8 = vstv %s174_s22  ;;  %s342_s26 = sld [smem:[#allocation2 + $0x182]]  ;;  %v90_v25 = vstv %s306_s7  ;;  %v86_v27 = vmul.f32 %v85_v24, %v84_v16  ;;  %v138_v54 = vld [vmem:[%s404_s2 + $0x4] sm:$0x1]  ;;  %v143_v61 = vld [vmem:[%s404_s2 + $0x5] sm:$0x1]  ;;  %s264_s2 = smov [#allocation7]  }
  0x25   :  { %v52_v10 = vmul.f32 %v51_v8, %v50_v2  ;;  %v56_v11 = vstv %s175_s23  ;;  %s349_s29 = sld [smem:[#allocation2 + $0x202]]  ;;  %v91_v28 = vmul.f32 %v90_v25, %v89_v17  ;;  %v95_v29 = vstv %s313_s11  ;;  %s163_s0 = sshll.u32 %s264_s2, 4  ;;  %s164_s0 = int_to_ptr.vmem [resolvable:$true] %s163_s0 }
  0x26   :  { %v61_v12 = vstv %s176_s24  ;;  %v48_v14 = vadd.f32 %v47_v7, %v43_v6  ;;  %v57_v15 = vmul.f32 %v56_v11, %v55_v5  ;;  %s340_s24 = sld [smem:[#allocation2 + $0x102]]  ;;  %v100_v33 = vstv %s318_s14  ;;  %s234_s1 = scalar_lea.vmem %s164_s0, 64 }
  0x27   :  { %v62_v18 = vmul.f32 %v61_v12, %v60_v9  ;;  %v66_v20 = vstv %s291_s25  ;;  %s355_s4 = sld [smem:[#allocation2 + $0x282]]  ;;  %v87_v37 = vadd.f32 %v86_v27, %v82_v23  ;;  %v96_v38 = vmul.f32 %v95_v29, %v94_v26  ;;  %p235_p10 = scmp.ne.s32.totalorder %s164_s0, %s234_s1 }
  0x28   :  { %v53_v22 = vadd.f32 %v52_v10, %v48_v14  ;;  %v67_v32 = vmul.f32 %v66_v20, %v65_v19  ;;  %v70_v36 = vstv %s311_s10  ;;  %v105_v39 = vstv %s320_s15  ;;  %p239_p11 = scmp.lt.s32.totalorder %s164_s0, %s164_s0  ;;  %p240_p12 = scmp.lt.s32.totalorder %s234_s1, %s234_s1 }
  0x29   :  { %v101_v42 = vmul.f32 %v100_v33, %v99_v30  ;;  %v120_v44 = vstv %s325_s18  ;;  %v124_v45 = vstv %s333_s21  ;;  %v92_v47 = vadd.f32 %v91_v28, %v87_v37  ;;  %s193_s18 = sld [smem:[#allocation5 + $0x2]] }
  0x2a   :  { %v58_v31 = vadd.f32 %v57_v15, %v53_v22  ;;  %v121_v48 = vmul.f32 %v120_v44, %v119_v34  ;;  %v125_v49 = vmul.f32 %v124_v45, %v123_v35  ;;  %v134_v53 = vstv %s342_s26  ;;  %p241_p13 = por %p240_p12, %p239_p11 }
  0x2b   :  { %v139_v55 = vstv %s349_s29  ;;  %v97_v56 = vadd.f32 %v96_v38, %v92_v47  ;;  %v106_v57 = vmul.f32 %v105_v39, %v104_v43  ;;  %v135_v59 = vmul.f32 %v134_v53, %v133_v46 }
  0x2c   :  { %v63_v41 = vadd.f32 %v62_v18, %v58_v31  ;;  %v129_v50 = vstv %s340_s24  ;;  %v126_v58 = vadd.f32 %v125_v49, %v121_v48  ;;  %v140_v1 = vmul.f32 %v139_v55, %v138_v54  ;;  %p242_p0 = pnand %p241_p13, %p235_p10 }
  0x2d   :  { %v130_v52 = vmul.f32 %v129_v50, %v128_v40  ;;  %v144_v62 = vstv %s355_s4  ;;  %v102_v63 = vadd.f32 %v101_v42, %v97_v56  ;;  %v109_v3 = vstv %s358_s5 }
  0x2e   :  { %v68_v51 = vadd.f32 %v67_v32, %v63_v41  ;;  %v145_v6 = vmul.f32 %v144_v62, %v143_v61 }
  0x2f   :  { %v131_v0 = vadd.f32 %v130_v52, %v126_v58  ;;  %v107_v4 = vadd.f32 %v106_v57, %v102_v63  ;;  %v148_v9 = vstv %s193_s18 }
  0x30   :  { %v71_v60 = vadd.f32 %v70_v36, %v68_v51 }
  0x31   :  { %v136_v5 = vadd.f32 %v135_v59, %v131_v0  ;;  %v110_v7 = vadd.f32 %v109_v3, %v107_v4 }
  0x32   :  { %v178_v2 = vmul.f32 -1.442695, %v71_v60 }
  0x33   :  { %v141_v8 = vadd.f32 %v140_v1, %v136_v5  ;;  %v186_v10 = vmul.f32 -1.442695, %v110_v7 }
  0x34   :  { %198 = vpow2.f32 %v178_v2 }
  0x35   :  { %v146_v11 = vadd.f32 %v145_v6, %v141_v8  ;;  %200 = vpow2.f32 %v186_v10 }
  0x37   :  { %v149_v12 = vadd.f32 %v148_v9, %v146_v11 }
  0x39   :  { %v194_v13 = vmul.f32 -1.442695, %v149_v12 }
  0x3b   :  { %202 = vpow2.f32 %v194_v13 }
  0x3e   :  { %v199_v14 = vpop.eup %198 }
  0x3f   :  { %v75_v15 = vadd.f32 1.0, %v199_v14  ;;  %v201_v16 = vpop.eup %200 }
  0x40   :  { %v114_v17 = vadd.f32 1.0, %v201_v16 }
  0x41   :  { %204 = vrcp.f32 %v75_v15 }
  0x42   :  { %206 = vrcp.f32 %v114_v17 }
  0x45   :  { %v203_v18 = vpop.eup %202 }
  0x46   :  { %v153_v19 = vadd.f32 1.0, %v203_v18 }
  0x48   :  { %208 = vrcp.f32 %v153_v19 }
  0x4b   :  { %v205_v20 = vpop.eup %204 }
  0x4c   :  { %78 = vst [vmem:[#allocation7] sm:$0x1] %v205_v20  ;;  %v207_v21 = vpop.eup %206 }
  0x4d   :  { %117 = vst [vmem:[#allocation7 + $0x1] sm:$0x1] %v207_v21 }
  0x52   :  { %v209_v22 = vpop.eup %208 }
  0x53   :  { %156 = vst [vmem:[#allocation7 + $0x2] sm:$0x1] %v209_v22 }
  0x54   :  { %245 = shalt.err (!%p242_p0)
}
  0x55   :  { %s246_s23 = scalar_lea.hbm %s405_s3, 64 }
  0x56   :  { %p247_p1 = scmp.ne.s32.totalorder %s405_s3, %s246_s23  ;;  %p250_p2 = scmp.lt.u32.totalorder %s246_s23, %s405_s3 }
  0x58   :  { %p252_p3 = pnand %p250_p2, %p247_p1 }
  0x5a   :  { %255 = shalt.err (!%p252_p3)
}
  0x5b   :  { %166 = dma.vmem_to_hbm [thread:$0]  %s164_s0, 64, %s405_s3, [#allocation3]  }
  0x5c   :  { %260 = dma.done.wait [#allocation3], 64  }
  0x5d   :  { %261 = vsyncadd [#allocation3], 4294967232 }
  0x5e   :  { %170 = vsyncpa [#allocation3], 1 }
  0x5f   :  { %171 = vsyncpa [#allocation4], 1 }
  0x60   :  { %172 = vsyncpa [#allocation6], 1 }

</bundles_post_ra>
